<compile_context>
chip_gen: v5e
topology: v5e:2x2
jax: 0.10.0
libtpu: 0.0.40
codegen_flags: <defaults>
</compile_context>

<pallas_src>
import jax
import jax.numpy as jnp
from jax.experimental import pallas as pl
from jax.experimental.pallas import tpu as pltpu


# ----------------------------------------------------------------------------
# Pallas kernel: one grid step scores the full batch against one entity tile
# ----------------------------------------------------------------------------
def _transe_score_kernel(gamma_ref, obj_ref, ent_ref, out_ref):
    # gamma_ref : SMEM (1,)    scalar margin (scalar-prefetch input)
    # obj_ref   : VMEM [B, D]  sub_emb + rel_emb, resident across grid steps
    # ent_ref   : VMEM [D, TE] entity-embedding tile, entities on the lane axis
    # out_ref   : VMEM [B, TE] sigmoid(gamma - L1) scores for this tile
    B, D = obj_ref.shape
    obj = obj_ref[...].astype(jnp.float32)               # [B, D] (few vregs)
    acc = jnp.zeros(out_ref.shape, jnp.float32)          # [B, TE] accumulator

    # Running L1 accumulation over the feature axis: lane-dense VPU work,
    # no [B, TE, D] broadcast and no cross-lane reduction.
    for d in range(D):
        ent_row = ent_ref[pl.ds(d, 1), :].astype(jnp.float32)   # [1, TE]
        obj_col = obj[:, d:d + 1]                               # [B, 1]
        acc = acc + jnp.abs(obj_col - ent_row)                  # [B, TE]

    gamma = gamma_ref[0]
    out_ref[...] = jax.nn.sigmoid(gamma - acc).astype(out_ref.dtype)


def transe_score(obj_emb, all_ent, gamma, *, tile_e=1024, ent_dtype=None):
    """score[b, e] = sigmoid(gamma - ||obj_emb[b] - all_ent[e]||_1)."""
    B, D = obj_emb.shape
    N, D2 = all_ent.shape
    assert D == D2

    # Optional bf16 streaming of the entity table (halves HBM traffic);
    # the kernel upcasts after load and accumulates in f32.
    if ent_dtype is not None:
        all_ent = all_ent.astype(ent_dtype)

    # Entities go on the lane axis: feed the kernel a [D, N] table.
    ent_t = all_ent.T

    # Tile / pad the entity axis to a lane-friendly multiple of 128.
    tile_e = int(min(tile_e, ((N + 127) // 128) * 128))
    num_tiles = (N + tile_e - 1) // tile_e
    n_pad = num_tiles * tile_e
    if n_pad != N:
        ent_t = jnp.pad(ent_t, ((0, 0), (0, n_pad - N)))

    obj_emb = obj_emb.astype(jnp.float32)
    gamma_arr = jnp.full((1,), gamma, dtype=jnp.float32)

    # VMEM budget: double-buffered entity tile + double-buffered output tile
    # + resident obj. Sized explicitly (safe on v7x's smaller VMEM).
    needed = (2 * D * tile_e * ent_t.dtype.itemsize
              + 2 * B * tile_e * 4
              + 2 * B * D * 4)
    vmem_limit = int(min(max(needed + (8 << 20), 32 << 20), 48 << 20))

    scores = pl.pallas_call(
        _transe_score_kernel,
        out_shape=jax.ShapeDtypeStruct((B, n_pad), jnp.float32),
        grid_spec=pltpu.PrefetchScalarGridSpec(
            num_scalar_prefetch=1,                               # gamma -> SMEM
            grid=(num_tiles,),
            in_specs=[
                pl.BlockSpec((B, D), lambda e, g: (0, 0)),        # obj (resident)
                pl.BlockSpec((D, tile_e), lambda e, g: (0, e)),   # entity tile
            ],
            out_specs=pl.BlockSpec((B, tile_e), lambda e, g: (0, e)),
        ),
        compiler_params=pltpu.CompilerParams(
            dimension_semantics=("parallel",),
            vmem_limit_bytes=vmem_limit,
        ),
    )(gamma_arr, obj_emb, ent_t)

    # Padded entity columns carry invalid scores -> slice them off here.
    return scores[:, :N]


# ----------------------------------------------------------------------------
# Module wrapper (parameter setup + glue)
# ----------------------------------------------------------------------------
class CompGCNTransE:
    def __init__(self, num_ent, num_rel, init_dim, gamma, key, ent_dtype=None):
        self.num_ent = num_ent
        self.num_rel = num_rel
        self.init_dim = init_dim
        self.gamma = gamma
        # Set ent_dtype=jnp.bfloat16 to stream the entity table in bf16
        # (f32 accumulation in-kernel); default f32 matches torch exactly.
        self.ent_dtype = ent_dtype
        k1, k2 = jax.random.split(key)
        # get_param -> xavier_normal_; deterministic synthetic init here.
        scale_e = (2.0 / (num_ent + init_dim)) ** 0.5
        scale_r = (2.0 / (num_rel + init_dim)) ** 0.5
        self.init_embed = scale_e * jax.random.normal(
            k1, (num_ent, init_dim), dtype=jnp.float32)
        self.init_rel = scale_r * jax.random.normal(
            k2, (num_rel, init_dim), dtype=jnp.float32)
        # bias parameter exists in the module but is unused by the TransE score.
        self.bias = jnp.zeros((num_ent,), dtype=jnp.float32)
        # TODO(synk): GNN-encoder path (CompGCNConv / CompGCNConvBasis) not
        # provided in the source; only disable_gnn_encoder=True is modeled.

    def forward(self, sub, rel):
        # forward_base (disable_gnn_encoder branch)
        r = jnp.concatenate([self.init_rel, -self.init_rel], axis=0)
        x = self.init_embed                      # hid_drop dropout in eval: identity
        sub_emb = jnp.take(x, sub, axis=0)       # torch.index_select(x, 0, sub)
        rel_emb = jnp.take(r, rel, axis=0)       # torch.index_select(r, 0, rel)
        obj_emb = sub_emb + rel_emb              # cheap B x D add done in the wrapper
        # TransE scoring: done in the Pallas kernel.
        return transe_score(obj_emb, x, self.gamma, ent_dtype=self.ent_dtype)


# ----------------------------------------------------------------------------
# Pure-JAX reference (for correctness check)
# ----------------------------------------------------------------------------
def reference_forward(model, sub, rel):
    r = jnp.concatenate([model.init_rel, -model.init_rel], axis=0)
    x = model.init_embed
    sub_emb = jnp.take(x, sub, axis=0)
    rel_emb = jnp.take(r, rel, axis=0)
    obj_emb = sub_emb + rel_emb
    dist = jnp.sum(jnp.abs(obj_emb[:, None, :] - x[None, :, :]), axis=2)
    return jax.nn.sigmoid(model.gamma - dist)


if __name__ == "__main__":
    key = jax.random.PRNGKey(0)
    k_model, k_sub, k_rel = jax.random.split(key, 3)

    NUM_ENT = 300     # deliberately NOT a multiple of 128 (exercises padding)
    NUM_REL = 4       # number of relations (r table has 2*NUM_REL rows)
    INIT_DIM = 32     # embedding dimension
    BATCH = 8
    GAMMA = 9.0

    model = CompGCNTransE(NUM_ENT, NUM_REL, INIT_DIM, GAMMA, k_model)

    sub = jax.random.randint(k_sub, (BATCH,), 0, NUM_ENT, dtype=jnp.int32)
    rel = jax.random.randint(k_rel, (BATCH,), 0, 2 * NUM_REL, dtype=jnp.int32)

    score = jax.block_until_ready(model.forward(sub, rel))
    ref = jax.block_until_ready(reference_forward(model, sub, rel))

    assert score.shape == (BATCH, NUM_ENT)
    assert jnp.allclose(score, ref, atol=1e-5, rtol=1e-5), (
        float(jnp.max(jnp.abs(score - ref))))

    print("KERNEL_OK")
</pallas_src>

<mosaic_0001>
module attributes {stable_mosaic.version = 11 : i64} {
  func.func @_transe_score_kernel(%arg0: i32, %arg1: memref<1xf32, #tpu.memory_space<smem>>, %arg2: memref<8x32xf32, #tpu.memory_space<vmem>>, %arg3: memref<32x384xf32, #tpu.memory_space<vmem>>, %arg4: memref<8x384xf32, #tpu.memory_space<vmem>>) attributes {dimension_semantics = [#tpu.dimension_semantics<parallel>], iteration_bounds = array<i64: 1>, scalar_prefetch = 1 : i64, scratch_operands = 0 : i64, tpu.core_type = #tpu.core_type<tc>, window_params = [{pipeline_mode = #tpu.pipeline_mode<synchronous>, transform_indices = @transform_0, window_bounds = array<i64: 8, 32>}, {transform_indices = @transform_1, window_bounds = array<i64: 32, 384>}, {transform_indices = @transform_2, window_bounds = array<i64: 8, 384>}]} {
    %c0 = arith.constant 0 : index
    %c0_0 = arith.constant 0 : index
    %0 = vector.load %arg2[%c0, %c0_0] : memref<8x32xf32, #tpu.memory_space<vmem>>, vector<8x32xf32>
    %cst = arith.constant 0.000000e+00 : f32
    %1 = vector.broadcast %cst : f32 to vector<8x384xf32>
    %c0_1 = arith.constant 0 : index
    %c0_2 = arith.constant 0 : index
    %2 = vector.load %arg3[%c0_1, %c0_2] : memref<32x384xf32, #tpu.memory_space<vmem>>, vector<1x384xf32>
    %3 = vector.extract_strided_slice %0 {offsets = [0, 0], sizes = [8, 1], strides = [1, 1]} : vector<8x32xf32> to vector<8x1xf32>
    %4 = vector.broadcast %3 : vector<8x1xf32> to vector<8x384xf32>
    %5 = vector.broadcast %2 : vector<1x384xf32> to vector<8x384xf32>
    %6 = arith.subf %4, %5 : vector<8x384xf32>
    %7 = math.absf %6 : vector<8x384xf32>
    %8 = arith.addf %1, %7 : vector<8x384xf32>
    %c1 = arith.constant 1 : index
    %c0_3 = arith.constant 0 : index
    %9 = vector.load %arg3[%c1, %c0_3] : memref<32x384xf32, #tpu.memory_space<vmem>>, vector<1x384xf32>
    %10 = vector.extract_strided_slice %0 {offsets = [0, 1], sizes = [8, 1], strides = [1, 1]} : vector<8x32xf32> to vector<8x1xf32>
    %11 = vector.broadcast %10 : vector<8x1xf32> to vector<8x384xf32>
    %12 = vector.broadcast %9 : vector<1x384xf32> to vector<8x384xf32>
    %13 = arith.subf %11, %12 : vector<8x384xf32>
    %14 = math.absf %13 : vector<8x384xf32>
    %15 = arith.addf %8, %14 : vector<8x384xf32>
    %c2 = arith.constant 2 : index
    %c0_4 = arith.constant 0 : index
    %16 = vector.load %arg3[%c2, %c0_4] : memref<32x384xf32, #tpu.memory_space<vmem>>, vector<1x384xf32>
    %17 = vector.extract_strided_slice %0 {offsets = [0, 2], sizes = [8, 1], strides = [1, 1]} : vector<8x32xf32> to vector<8x1xf32>
    %18 = vector.broadcast %17 : vector<8x1xf32> to vector<8x384xf32>
    %19 = vector.broadcast %16 : vector<1x384xf32> to vector<8x384xf32>
    %20 = arith.subf %18, %19 : vector<8x384xf32>
    %21 = math.absf %20 : vector<8x384xf32>
    %22 = arith.addf %15, %21 : vector<8x384xf32>
    %c3 = arith.constant 3 : index
    %c0_5 = arith.constant 0 : index
    %23 = vector.load %arg3[%c3, %c0_5] : memref<32x384xf32, #tpu.memory_space<vmem>>, vector<1x384xf32>
    %24 = vector.extract_strided_slice %0 {offsets = [0, 3], sizes = [8, 1], strides = [1, 1]} : vector<8x32xf32> to vector<8x1xf32>
    %25 = vector.broadcast %24 : vector<8x1xf32> to vector<8x384xf32>
    %26 = vector.broadcast %23 : vector<1x384xf32> to vector<8x384xf32>
    %27 = arith.subf %25, %26 : vector<8x384xf32>
    %28 = math.absf %27 : vector<8x384xf32>
    %29 = arith.addf %22, %28 : vector<8x384xf32>
    %c4 = arith.constant 4 : index
    %c0_6 = arith.constant 0 : index
    %30 = vector.load %arg3[%c4, %c0_6] : memref<32x384xf32, #tpu.memory_space<vmem>>, vector<1x384xf32>
    %31 = vector.extract_strided_slice %0 {offsets = [0, 4], sizes = [8, 1], strides = [1, 1]} : vector<8x32xf32> to vector<8x1xf32>
    %32 = vector.broadcast %31 : vector<8x1xf32> to vector<8x384xf32>
    %33 = vector.broadcast %30 : vector<1x384xf32> to vector<8x384xf32>
    %34 = arith.subf %32, %33 : vector<8x384xf32>
    %35 = math.absf %34 : vector<8x384xf32>
    %36 = arith.addf %29, %35 : vector<8x384xf32>
    %c5 = arith.constant 5 : index
    %c0_7 = arith.constant 0 : index
    %37 = vector.load %arg3[%c5, %c0_7] : memref<32x384xf32, #tpu.memory_space<vmem>>, vector<1x384xf32>
    %38 = vector.extract_strided_slice %0 {offsets = [0, 5], sizes = [8, 1], strides = [1, 1]} : vector<8x32xf32> to vector<8x1xf32>
    %39 = vector.broadcast %38 : vector<8x1xf32> to vector<8x384xf32>
    %40 = vector.broadcast %37 : vector<1x384xf32> to vector<8x384xf32>
    %41 = arith.subf %39, %40 : vector<8x384xf32>
    %42 = math.absf %41 : vector<8x384xf32>
    %43 = arith.addf %36, %42 : vector<8x384xf32>
    %c6 = arith.constant 6 : index
    %c0_8 = arith.constant 0 : index
    %44 = vector.load %arg3[%c6, %c0_8] : memref<32x384xf32, #tpu.memory_space<vmem>>, vector<1x384xf32>
    %45 = vector.extract_strided_slice %0 {offsets = [0, 6], sizes = [8, 1], strides = [1, 1]} : vector<8x32xf32> to vector<8x1xf32>
    %46 = vector.broadcast %45 : vector<8x1xf32> to vector<8x384xf32>
    %47 = vector.broadcast %44 : vector<1x384xf32> to vector<8x384xf32>
    %48 = arith.subf %46, %47 : vector<8x384xf32>
    %49 = math.absf %48 : vector<8x384xf32>
    %50 = arith.addf %43, %49 : vector<8x384xf32>
    %c7 = arith.constant 7 : index
    %c0_9 = arith.constant 0 : index
    %51 = vector.load %arg3[%c7, %c0_9] : memref<32x384xf32, #tpu.memory_space<vmem>>, vector<1x384xf32>
    %52 = vector.extract_strided_slice %0 {offsets = [0, 7], sizes = [8, 1], strides = [1, 1]} : vector<8x32xf32> to vector<8x1xf32>
    %53 = vector.broadcast %52 : vector<8x1xf32> to vector<8x384xf32>
    %54 = vector.broadcast %51 : vector<1x384xf32> to vector<8x384xf32>
    %55 = arith.subf %53, %54 : vector<8x384xf32>
    %56 = math.absf %55 : vector<8x384xf32>
    %57 = arith.addf %50, %56 : vector<8x384xf32>
    %c8 = arith.constant 8 : index
    %c0_10 = arith.constant 0 : index
    %58 = vector.load %arg3[%c8, %c0_10] : memref<32x384xf32, #tpu.memory_space<vmem>>, vector<1x384xf32>
    %59 = vector.extract_strided_slice %0 {offsets = [0, 8], sizes = [8, 1], strides = [1, 1]} : vector<8x32xf32> to vector<8x1xf32>
    %60 = vector.broadcast %59 : vector<8x1xf32> to vector<8x384xf32>
    %61 = vector.broadcast %58 : vector<1x384xf32> to vector<8x384xf32>
    %62 = arith.subf %60, %61 : vector<8x384xf32>
    %63 = math.absf %62 : vector<8x384xf32>
    %64 = arith.addf %57, %63 : vector<8x384xf32>
    %c9 = arith.constant 9 : index
    %c0_11 = arith.constant 0 : index
    %65 = vector.load %arg3[%c9, %c0_11] : memref<32x384xf32, #tpu.memory_space<vmem>>, vector<1x384xf32>
    %66 = vector.extract_strided_slice %0 {offsets = [0, 9], sizes = [8, 1], strides = [1, 1]} : vector<8x32xf32> to vector<8x1xf32>
    %67 = vector.broadcast %66 : vector<8x1xf32> to vector<8x384xf32>
    %68 = vector.broadcast %65 : vector<1x384xf32> to vector<8x384xf32>
    %69 = arith.subf %67, %68 : vector<8x384xf32>
    %70 = math.absf %69 : vector<8x384xf32>
    %71 = arith.addf %64, %70 : vector<8x384xf32>
    %c10 = arith.constant 10 : index
    %c0_12 = arith.constant 0 : index
    %72 = vector.load %arg3[%c10, %c0_12] : memref<32x384xf32, #tpu.memory_space<vmem>>, vector<1x384xf32>
    %73 = vector.extract_strided_slice %0 {offsets = [0, 10], sizes = [8, 1], strides = [1, 1]} : vector<8x32xf32> to vector<8x1xf32>
    %74 = vector.broadcast %73 : vector<8x1xf32> to vector<8x384xf32>
    %75 = vector.broadcast %72 : vector<1x384xf32> to vector<8x384xf32>
    %76 = arith.subf %74, %75 : vector<8x384xf32>
    %77 = math.absf %76 : vector<8x384xf32>
    %78 = arith.addf %71, %77 : vector<8x384xf32>
    %c11 = arith.constant 11 : index
    %c0_13 = arith.constant 0 : index
    %79 = vector.load %arg3[%c11, %c0_13] : memref<32x384xf32, #tpu.memory_space<vmem>>, vector<1x384xf32>
    %80 = vector.extract_strided_slice %0 {offsets = [0, 11], sizes = [8, 1], strides = [1, 1]} : vector<8x32xf32> to vector<8x1xf32>
    %81 = vector.broadcast %80 : vector<8x1xf32> to vector<8x384xf32>
    %82 = vector.broadcast %79 : vector<1x384xf32> to vector<8x384xf32>
    %83 = arith.subf %81, %82 : vector<8x384xf32>
    %84 = math.absf %83 : vector<8x384xf32>
    %85 = arith.addf %78, %84 : vector<8x384xf32>
    %c12 = arith.constant 12 : index
    %c0_14 = arith.constant 0 : index
    %86 = vector.load %arg3[%c12, %c0_14] : memref<32x384xf32, #tpu.memory_space<vmem>>, vector<1x384xf32>
    %87 = vector.extract_strided_slice %0 {offsets = [0, 12], sizes = [8, 1], strides = [1, 1]} : vector<8x32xf32> to vector<8x1xf32>
    %88 = vector.broadcast %87 : vector<8x1xf32> to vector<8x384xf32>
    %89 = vector.broadcast %86 : vector<1x384xf32> to vector<8x384xf32>
    %90 = arith.subf %88, %89 : vector<8x384xf32>
    %91 = math.absf %90 : vector<8x384xf32>
    %92 = arith.addf %85, %91 : vector<8x384xf32>
    %c13 = arith.constant 13 : index
    %c0_15 = arith.constant 0 : index
    %93 = vector.load %arg3[%c13, %c0_15] : memref<32x384xf32, #tpu.memory_space<vmem>>, vector<1x384xf32>
    %94 = vector.extract_strided_slice %0 {offsets = [0, 13], sizes = [8, 1], strides = [1, 1]} : vector<8x32xf32> to vector<8x1xf32>
    %95 = vector.broadcast %94 : vector<8x1xf32> to vector<8x384xf32>
    %96 = vector.broadcast %93 : vector<1x384xf32> to vector<8x384xf32>
    %97 = arith.subf %95, %96 : vector<8x384xf32>
    %98 = math.absf %97 : vector<8x384xf32>
    %99 = arith.addf %92, %98 : vector<8x384xf32>
    %c14 = arith.constant 14 : index
    %c0_16 = arith.constant 0 : index
    %100 = vector.load %arg3[%c14, %c0_16] : memref<32x384xf32, #tpu.memory_space<vmem>>, vector<1x384xf32>
    %101 = vector.extract_strided_slice %0 {offsets = [0, 14], sizes = [8, 1], strides = [1, 1]} : vector<8x32xf32> to vector<8x1xf32>
    %102 = vector.broadcast %101 : vector<8x1xf32> to vector<8x384xf32>
    %103 = vector.broadcast %100 : vector<1x384xf32> to vector<8x384xf32>
    %104 = arith.subf %102, %103 : vector<8x384xf32>
    %105 = math.absf %104 : vector<8x384xf32>
    %106 = arith.addf %99, %105 : vector<8x384xf32>
    %c15 = arith.constant 15 : index
    %c0_17 = arith.constant 0 : index
    %107 = vector.load %arg3[%c15, %c0_17] : memref<32x384xf32, #tpu.memory_space<vmem>>, vector<1x384xf32>
    %108 = vector.extract_strided_slice %0 {offsets = [0, 15], sizes = [8, 1], strides = [1, 1]} : vector<8x32xf32> to vector<8x1xf32>
    %109 = vector.broadcast %108 : vector<8x1xf32> to vector<8x384xf32>
    %110 = vector.broadcast %107 : vector<1x384xf32> to vector<8x384xf32>
    %111 = arith.subf %109, %110 : vector<8x384xf32>
    %112 = math.absf %111 : vector<8x384xf32>
    %113 = arith.addf %106, %112 : vector<8x384xf32>
    %c16 = arith.constant 16 : index
    %c0_18 = arith.constant 0 : index
    %114 = vector.load %arg3[%c16, %c0_18] : memref<32x384xf32, #tpu.memory_space<vmem>>, vector<1x384xf32>
    %115 = vector.extract_strided_slice %0 {offsets = [0, 16], sizes = [8, 1], strides = [1, 1]} : vector<8x32xf32> to vector<8x1xf32>
    %116 = vector.broadcast %115 : vector<8x1xf32> to vector<8x384xf32>
    %117 = vector.broadcast %114 : vector<1x384xf32> to vector<8x384xf32>
    %118 = arith.subf %116, %117 : vector<8x384xf32>
    %119 = math.absf %118 : vector<8x384xf32>
    %120 = arith.addf %113, %119 : vector<8x384xf32>
    %c17 = arith.constant 17 : index
    %c0_19 = arith.constant 0 : index
    %121 = vector.load %arg3[%c17, %c0_19] : memref<32x384xf32, #tpu.memory_space<vmem>>, vector<1x384xf32>
    %122 = vector.extract_strided_slice %0 {offsets = [0, 17], sizes = [8, 1], strides = [1, 1]} : vector<8x32xf32> to vector<8x1xf32>
    %123 = vector.broadcast %122 : vector<8x1xf32> to vector<8x384xf32>
    %124 = vector.broadcast %121 : vector<1x384xf32> to vector<8x384xf32>
    %125 = arith.subf %123, %124 : vector<8x384xf32>
    %126 = math.absf %125 : vector<8x384xf32>
    %127 = arith.addf %120, %126 : vector<8x384xf32>
    %c18 = arith.constant 18 : index
    %c0_20 = arith.constant 0 : index
    %128 = vector.load %arg3[%c18, %c0_20] : memref<32x384xf32, #tpu.memory_space<vmem>>, vector<1x384xf32>
    %129 = vector.extract_strided_slice %0 {offsets = [0, 18], sizes = [8, 1], strides = [1, 1]} : vector<8x32xf32> to vector<8x1xf32>
    %130 = vector.broadcast %129 : vector<8x1xf32> to vector<8x384xf32>
    %131 = vector.broadcast %128 : vector<1x384xf32> to vector<8x384xf32>
    %132 = arith.subf %130, %131 : vector<8x384xf32>
    %133 = math.absf %132 : vector<8x384xf32>
    %134 = arith.addf %127, %133 : vector<8x384xf32>
    %c19 = arith.constant 19 : index
    %c0_21 = arith.constant 0 : index
    %135 = vector.load %arg3[%c19, %c0_21] : memref<32x384xf32, #tpu.memory_space<vmem>>, vector<1x384xf32>
    %136 = vector.extract_strided_slice %0 {offsets = [0, 19], sizes = [8, 1], strides = [1, 1]} : vector<8x32xf32> to vector<8x1xf32>
    %137 = vector.broadcast %136 : vector<8x1xf32> to vector<8x384xf32>
    %138 = vector.broadcast %135 : vector<1x384xf32> to vector<8x384xf32>
    %139 = arith.subf %137, %138 : vector<8x384xf32>
    %140 = math.absf %139 : vector<8x384xf32>
    %141 = arith.addf %134, %140 : vector<8x384xf32>
    %c20 = arith.constant 20 : index
    %c0_22 = arith.constant 0 : index
    %142 = vector.load %arg3[%c20, %c0_22] : memref<32x384xf32, #tpu.memory_space<vmem>>, vector<1x384xf32>
    %143 = vector.extract_strided_slice %0 {offsets = [0, 20], sizes = [8, 1], strides = [1, 1]} : vector<8x32xf32> to vector<8x1xf32>
    %144 = vector.broadcast %143 : vector<8x1xf32> to vector<8x384xf32>
    %145 = vector.broadcast %142 : vector<1x384xf32> to vector<8x384xf32>
    %146 = arith.subf %144, %145 : vector<8x384xf32>
    %147 = math.absf %146 : vector<8x384xf32>
    %148 = arith.addf %141, %147 : vector<8x384xf32>
    %c21 = arith.constant 21 : index
    %c0_23 = arith.constant 0 : index
    %149 = vector.load %arg3[%c21, %c0_23] : memref<32x384xf32, #tpu.memory_space<vmem>>, vector<1x384xf32>
    %150 = vector.extract_strided_slice %0 {offsets = [0, 21], sizes = [8, 1], strides = [1, 1]} : vector<8x32xf32> to vector<8x1xf32>
    %151 = vector.broadcast %150 : vector<8x1xf32> to vector<8x384xf32>
    %152 = vector.broadcast %149 : vector<1x384xf32> to vector<8x384xf32>
    %153 = arith.subf %151, %152 : vector<8x384xf32>
    %154 = math.absf %153 : vector<8x384xf32>
    %155 = arith.addf %148, %154 : vector<8x384xf32>
    %c22 = arith.constant 22 : index
    %c0_24 = arith.constant 0 : index
    %156 = vector.load %arg3[%c22, %c0_24] : memref<32x384xf32, #tpu.memory_space<vmem>>, vector<1x384xf32>
    %157 = vector.extract_strided_slice %0 {offsets = [0, 22], sizes = [8, 1], strides = [1, 1]} : vector<8x32xf32> to vector<8x1xf32>
    %158 = vector.broadcast %157 : vector<8x1xf32> to vector<8x384xf32>
    %159 = vector.broadcast %156 : vector<1x384xf32> to vector<8x384xf32>
    %160 = arith.subf %158, %159 : vector<8x384xf32>
    %161 = math.absf %160 : vector<8x384xf32>
    %162 = arith.addf %155, %161 : vector<8x384xf32>
    %c23 = arith.constant 23 : index
    %c0_25 = arith.constant 0 : index
    %163 = vector.load %arg3[%c23, %c0_25] : memref<32x384xf32, #tpu.memory_space<vmem>>, vector<1x384xf32>
    %164 = vector.extract_strided_slice %0 {offsets = [0, 23], sizes = [8, 1], strides = [1, 1]} : vector<8x32xf32> to vector<8x1xf32>
    %165 = vector.broadcast %164 : vector<8x1xf32> to vector<8x384xf32>
    %166 = vector.broadcast %163 : vector<1x384xf32> to vector<8x384xf32>
    %167 = arith.subf %165, %166 : vector<8x384xf32>
    %168 = math.absf %167 : vector<8x384xf32>
    %169 = arith.addf %162, %168 : vector<8x384xf32>
    %c24 = arith.constant 24 : index
    %c0_26 = arith.constant 0 : index
    %170 = vector.load %arg3[%c24, %c0_26] : memref<32x384xf32, #tpu.memory_space<vmem>>, vector<1x384xf32>
    %171 = vector.extract_strided_slice %0 {offsets = [0, 24], sizes = [8, 1], strides = [1, 1]} : vector<8x32xf32> to vector<8x1xf32>
    %172 = vector.broadcast %171 : vector<8x1xf32> to vector<8x384xf32>
    %173 = vector.broadcast %170 : vector<1x384xf32> to vector<8x384xf32>
    %174 = arith.subf %172, %173 : vector<8x384xf32>
    %175 = math.absf %174 : vector<8x384xf32>
    %176 = arith.addf %169, %175 : vector<8x384xf32>
    %c25 = arith.constant 25 : index
    %c0_27 = arith.constant 0 : index
    %177 = vector.load %arg3[%c25, %c0_27] : memref<32x384xf32, #tpu.memory_space<vmem>>, vector<1x384xf32>
    %178 = vector.extract_strided_slice %0 {offsets = [0, 25], sizes = [8, 1], strides = [1, 1]} : vector<8x32xf32> to vector<8x1xf32>
    %179 = vector.broadcast %178 : vector<8x1xf32> to vector<8x384xf32>
    %180 = vector.broadcast %177 : vector<1x384xf32> to vector<8x384xf32>
    %181 = arith.subf %179, %180 : vector<8x384xf32>
    %182 = math.absf %181 : vector<8x384xf32>
    %183 = arith.addf %176, %182 : vector<8x384xf32>
    %c26 = arith.constant 26 : index
    %c0_28 = arith.constant 0 : index
    %184 = vector.load %arg3[%c26, %c0_28] : memref<32x384xf32, #tpu.memory_space<vmem>>, vector<1x384xf32>
    %185 = vector.extract_strided_slice %0 {offsets = [0, 26], sizes = [8, 1], strides = [1, 1]} : vector<8x32xf32> to vector<8x1xf32>
    %186 = vector.broadcast %185 : vector<8x1xf32> to vector<8x384xf32>
    %187 = vector.broadcast %184 : vector<1x384xf32> to vector<8x384xf32>
    %188 = arith.subf %186, %187 : vector<8x384xf32>
    %189 = math.absf %188 : vector<8x384xf32>
    %190 = arith.addf %183, %189 : vector<8x384xf32>
    %c27 = arith.constant 27 : index
    %c0_29 = arith.constant 0 : index
    %191 = vector.load %arg3[%c27, %c0_29] : memref<32x384xf32, #tpu.memory_space<vmem>>, vector<1x384xf32>
    %192 = vector.extract_strided_slice %0 {offsets = [0, 27], sizes = [8, 1], strides = [1, 1]} : vector<8x32xf32> to vector<8x1xf32>
    %193 = vector.broadcast %192 : vector<8x1xf32> to vector<8x384xf32>
    %194 = vector.broadcast %191 : vector<1x384xf32> to vector<8x384xf32>
    %195 = arith.subf %193, %194 : vector<8x384xf32>
    %196 = math.absf %195 : vector<8x384xf32>
    %197 = arith.addf %190, %196 : vector<8x384xf32>
    %c28 = arith.constant 28 : index
    %c0_30 = arith.constant 0 : index
    %198 = vector.load %arg3[%c28, %c0_30] : memref<32x384xf32, #tpu.memory_space<vmem>>, vector<1x384xf32>
    %199 = vector.extract_strided_slice %0 {offsets = [0, 28], sizes = [8, 1], strides = [1, 1]} : vector<8x32xf32> to vector<8x1xf32>
    %200 = vector.broadcast %199 : vector<8x1xf32> to vector<8x384xf32>
    %201 = vector.broadcast %198 : vector<1x384xf32> to vector<8x384xf32>
    %202 = arith.subf %200, %201 : vector<8x384xf32>
    %203 = math.absf %202 : vector<8x384xf32>
    %204 = arith.addf %197, %203 : vector<8x384xf32>
    %c29 = arith.constant 29 : index
    %c0_31 = arith.constant 0 : index
    %205 = vector.load %arg3[%c29, %c0_31] : memref<32x384xf32, #tpu.memory_space<vmem>>, vector<1x384xf32>
    %206 = vector.extract_strided_slice %0 {offsets = [0, 29], sizes = [8, 1], strides = [1, 1]} : vector<8x32xf32> to vector<8x1xf32>
    %207 = vector.broadcast %206 : vector<8x1xf32> to vector<8x384xf32>
    %208 = vector.broadcast %205 : vector<1x384xf32> to vector<8x384xf32>
    %209 = arith.subf %207, %208 : vector<8x384xf32>
    %210 = math.absf %209 : vector<8x384xf32>
    %211 = arith.addf %204, %210 : vector<8x384xf32>
    %c30 = arith.constant 30 : index
    %c0_32 = arith.constant 0 : index
    %212 = vector.load %arg3[%c30, %c0_32] : memref<32x384xf32, #tpu.memory_space<vmem>>, vector<1x384xf32>
    %213 = vector.extract_strided_slice %0 {offsets = [0, 30], sizes = [8, 1], strides = [1, 1]} : vector<8x32xf32> to vector<8x1xf32>
    %214 = vector.broadcast %213 : vector<8x1xf32> to vector<8x384xf32>
    %215 = vector.broadcast %212 : vector<1x384xf32> to vector<8x384xf32>
    %216 = arith.subf %214, %215 : vector<8x384xf32>
    %217 = math.absf %216 : vector<8x384xf32>
    %218 = arith.addf %211, %217 : vector<8x384xf32>
    %c31 = arith.constant 31 : index
    %c0_33 = arith.constant 0 : index
    %219 = vector.load %arg3[%c31, %c0_33] : memref<32x384xf32, #tpu.memory_space<vmem>>, vector<1x384xf32>
    %220 = vector.extract_strided_slice %0 {offsets = [0, 31], sizes = [8, 1], strides = [1, 1]} : vector<8x32xf32> to vector<8x1xf32>
    %221 = vector.broadcast %220 : vector<8x1xf32> to vector<8x384xf32>
    %222 = vector.broadcast %219 : vector<1x384xf32> to vector<8x384xf32>
    %223 = arith.subf %221, %222 : vector<8x384xf32>
    %224 = math.absf %223 : vector<8x384xf32>
    %225 = arith.addf %218, %224 : vector<8x384xf32>
    %c0_34 = arith.constant 0 : index
    %226 = memref.load %arg1[%c0_34] : memref<1xf32, #tpu.memory_space<smem>>
    %227 = vector.broadcast %226 : f32 to vector<8x384xf32>
    %228 = arith.subf %227, %225 : vector<8x384xf32>
    %229 = arith.negf %228 : vector<8x384xf32>
    %230 = math.exp %229 : vector<8x384xf32>
    %cst_35 = arith.constant 1.000000e+00 : f32
    %231 = vector.broadcast %cst_35 : f32 to vector<8x384xf32>
    %232 = arith.addf %231, %230 : vector<8x384xf32>
    %233 = arith.divf %231, %232 : vector<8x384xf32>
    %c0_36 = arith.constant 0 : index
    %c0_37 = arith.constant 0 : index
    %234 = vector.load %arg4[%c0_36, %c0_37] : memref<8x384xf32, #tpu.memory_space<vmem>>, vector<8x384xf32>
    tpu.vector_store %arg4[%c0_36, %c0_37], %233 {strides = array<i32>} : memref<8x384xf32, #tpu.memory_space<vmem>>, vector<8x384xf32>,
    return
  }
  func.func @transform_0(%arg0: i32, %arg1: memref<1xf32, #tpu.memory_space<smem>>) -> (i32, i32) {
    %c0_i32 = arith.constant 0 : i32
    %c0_i32_0 = arith.constant 0 : i32
    %c0_i32_1 = arith.constant 0 : i32
    return %c0_i32, %c0_i32_0 : i32, i32
  }
  func.func @transform_1(%arg0: i32, %arg1: memref<1xf32, #tpu.memory_space<smem>>) -> (i32, i32) {
    %c0_i32 = arith.constant 0 : i32
    %c0_i32_0 = arith.constant 0 : i32
    return %c0_i32, %arg0 : i32, i32
  }
  func.func @transform_2(%arg0: i32, %arg1: memref<1xf32, #tpu.memory_space<smem>>) -> (i32, i32) {
    %c0_i32 = arith.constant 0 : i32
    %c0_i32_0 = arith.constant 0 : i32
    return %c0_i32, %arg0 : i32, i32
  }
}

</mosaic_0001>

<bundles_post_ra>
// kernel: tpu_custom_call.1
= control target key start
LH: loop header
LB: loop body
LE: loop exit
PB: predicated region body
PF: predicated region fallthrough
CT: control target
= control target key end

     0   :  { %9 = vsyncpa [#allocation5], 0  ;;  %s1126_s0 = inlined_call_operand.<no memory space> [shape: f32[1], index: 0, kind: input, shape index: {}]   ;;  %s1127_s1 = inlined_call_operand.hbm [shape: f32[8,32], index: 1, kind: input, shape index: {}]   ;;  %s1128_s2 = inlined_call_operand.hbm [shape: f32[32,384], index: 2, kind: input, shape index: {}]   ;;  %s1129_s3 = inlined_call_operand.hbm [shape: f32[8,384], index: 3, kind: output, shape index: {}]  }
   0x1   :  { %10 = vsyncpa [#allocation8], 0 }
   0x2   :  { %11 = vsyncpa [#allocation6], 0  ;;  %s17_s14 = sshll.u32 %s1127_s1, 4  ;;  %s995_s15 = smov [#allocation4]   ;;  %s18_s14 = int_to_ptr.hbm [resolvable:$true] %s17_s14 }
   0x3   :  { %s19_s16 = sshll.u32 %s995_s15, 4  ;;  %s27_s19 = sshll.u32 %s1128_s2, 4  ;;  %s20_s16 = int_to_ptr.vmem [resolvable:$true] %s19_s16  ;;  %s28_s19 = int_to_ptr.hbm [resolvable:$true] %s27_s19 }
   0x4   :  { %22 = dma.hbm_to_vmem [thread:$0]  %s18_s14, 128, %s20_s16, [#allocation5]  }
   0x5   :  { %s996_s20 = smov [#allocation7]   ;;  %s997_s22 = smov 384  }
   0x6   :  { %s29_s21 = sshll.u32 %s996_s20, 4  ;;  %s998_s23 = smov 24   ;;  %s30_s21 = int_to_ptr.vmem [resolvable:$true] %s29_s21 }
   0x7   :  { %35 = dma.hbm_to_vmem [thread:$0]  %s28_s19, 1536, %s30_s21, [#allocation8], %s997_s22, %s997_s22, %s998_s23  }
   0x8   :  { %989 = dma.done.wait [#allocation5], 128  }
   0x9   :  { %990 = vsyncadd [#allocation5], 4294967168 }
   0xa   :  { %991 = dma.done.wait [#allocation8], 1536  }
   0xb   :  { %992 = vsyncadd [#allocation8], 4294965760  ;;  %v999_v0 = vmov 2   ;;  %v1000_v1 = vmov 0   ;;  %v1001_v2 = vmov 4   ;;  %v1058_v3 = vld [vmem:[#allocation4] sm:$0xff] }
   0xc   :  { %874 = vset.pattern.permute.xlu1 %v999_v0  ;;  %872 = vset.pattern.permute.xlu0 %v1000_v1  ;;  %v1002_v4 = vmov 3   ;;  %v1003_v5 = vmov 1   ;;  %v1004_v6 = vmov 5   ;;  %v1005_v7 = vmov 6   ;;  %s821_s27 = sshll.u32 %s1129_s3, 4  ;;  %s822_s27 = int_to_ptr.hbm [resolvable:$true] %s821_s27 }
   0xd   :  { %876 = vset.pattern.permute.xlu2 %v1001_v2  ;;  %92 = vperm.xlu1 %874, %v1058_v3   ;;  %v1006_v8 = vmov 8   ;;  %v1007_v9 = vmov 7   ;;  %v1008_v10 = vmov 9   ;;  %v1009_v11 = vmov 13  }
   0xe   :  { %48 = vperm.xlu0 %872, %v1058_v3   ;;  %136 = vperm.xlu2 %876, %v1058_v3   ;;  %v1010_v12 = vmov 10   ;;  %v1011_v13 = vmov 11   ;;  %v1012_v14 = vmov 18   ;;  %v1013_v15 = vmov 12  }
   0xf   :  { %v1014_v16 = vmov 14   ;;  %v1015_v17 = vmov 23   ;;  %v1016_v18 = vmov 15   ;;  %v1017_v19 = vmov 16  }
  0x10   :  { %v1018_v20 = vmov 17   ;;  %v1019_v21 = vmov 28   ;;  %v1020_v22 = vmov 19   ;;  %v1021_v23 = vmov 20  }
  0x11   :  { %v1022_v24 = vmov 31   ;;  %v1023_v25 = vmov 21   ;;  %v1024_v26 = vmov 22   ;;  %v1025_v27 = vmov 24  }
  0x12   :  { %v1026_v28 = vmov 25   ;;  %v1027_v29 = vmov 26   ;;  %v1028_v30 = vmov 27   ;;  %v1029_v31 = vmov 29  }
  0x13   :  { %v1030_v32 = vmov 30   ;;  %v45_v35 = vld [vmem:[#allocation7] ss:$8 sm:$0x7] }
  0x14   :  { %v90_v38 = vld [vmem:[#allocation7 + $0x2] ss:$8 sm:$0x7]  ;;  %v52_v39 = vperm.slane %v45_v35, 0  ;;  %v53_v40 = vperm.slane %v45_v35, 1  ;;  %v54_v41 = vperm.slane %v45_v35, 2 }
  0x15   :  { %875 = vset.pattern.permute.xlu1 %v1002_v4  ;;  %v68_v42 = vld [vmem:[#allocation7 + $0x1] ss:$8 sm:$0x7]  ;;  %v96_v43 = vperm.slane %v90_v38, 0  ;;  %v97_v45 = vperm.slane %v90_v38, 1  ;;  %v98_v46 = vperm.slane %v90_v38, 2 }
  0x16   :  { %873 = vset.pattern.permute.xlu0 %v1003_v5  ;;  %114 = vperm.xlu1 %875, %v1058_v3   ;;  %v134_v44 = vld [vmem:[#allocation7 + $0x4] ss:$8 sm:$0x7]  ;;  %v112_v48 = vld [vmem:[#allocation7 + $0x3] ss:$8 sm:$0x7] }
  0x17   :  { %70 = vperm.xlu0 %873, %v1058_v3   ;;  %877 = vset.pattern.permute.xlu2 %v1004_v6  ;;  %v74_v49 = vperm.slane %v68_v42, 0  ;;  %v75_v52 = vperm.slane %v68_v42, 1  ;;  %v76_v53 = vperm.slane %v68_v42, 2  ;;  %v140_v55 = vperm.slane %v134_v44, 0 }
  0x18   :  { %158 = vperm.xlu2 %877, %v1058_v3   ;;  %v141_v56 = vperm.slane %v134_v44, 1  ;;  %v118_v58 = vperm.slane %v112_v48, 0  ;;  %v119_v59 = vperm.slane %v112_v48, 1  ;;  %v120_v60 = vperm.slane %v112_v48, 2 }
  0x19   :  { %v156_v63 = vld [vmem:[#allocation7 + $0x5] ss:$8 sm:$0x7] }
  0x1e   :  { %878 = vset.pattern.permute.xlu1 %v1005_v7 }
  0x1f   :  { %880 = vset.pattern.permute.xlu0 %v1006_v8  ;;  %180 = vperm.xlu1 %878, %v1058_v3   ;;  %v142_v8 = vperm.slane %v134_v44, 2 }
  0x20   :  { %224 = vperm.xlu0 %880, %v1058_v3   ;;  %879 = vset.pattern.permute.xlu2 %v1007_v9  ;;  %v162_v9 = vperm.slane %v156_v63, 0 }
  0x21   :  { %202 = vperm.xlu2 %879, %v1058_v3  }
  0x27   :  { %881 = vset.pattern.permute.xlu1 %v1008_v10  ;;  %v163_v10 = vperm.slane %v156_v63, 1 }
  0x28   :  { %885 = vset.pattern.permute.xlu0 %v1009_v11  ;;  %246 = vperm.xlu1 %881, %v1058_v3   ;;  %v164_v11 = vperm.slane %v156_v63, 2 }
  0x29   :  { %334 = vperm.xlu0 %885, %v1058_v3   ;;  %882 = vset.pattern.permute.xlu2 %v1010_v12 }
  0x2a   :  { %268 = vperm.xlu2 %882, %v1058_v3  }
  0x30   :  { %883 = vset.pattern.permute.xlu1 %v1011_v13 }
  0x31   :  { %890 = vset.pattern.permute.xlu0 %v1012_v14  ;;  %290 = vperm.xlu1 %883, %v1058_v3  }
  0x32   :  { %444 = vperm.xlu0 %890, %v1058_v3   ;;  %884 = vset.pattern.permute.xlu2 %v1013_v15 }
  0x33   :  { %312 = vperm.xlu2 %884, %v1058_v3  }
  0x39   :  { %886 = vset.pattern.permute.xlu1 %v1014_v16 }
  0x3a   :  { %895 = vset.pattern.permute.xlu0 %v1015_v17  ;;  %356 = vperm.xlu1 %886, %v1058_v3  }
  0x3b   :  { %554 = vperm.xlu0 %895, %v1058_v3   ;;  %887 = vset.pattern.permute.xlu2 %v1016_v18 }
  0x3c   :  { %378 = vperm.xlu2 %887, %v1058_v3  }
  0x42   :  { %888 = vset.pattern.permute.xlu1 %v1017_v19 }
  0x43   :  { %400 = vperm.xlu1 %888, %v1058_v3   ;;  %900 = vset.pattern.permute.xlu0 %v1019_v21 }
  0x44   :  { %889 = vset.pattern.permute.xlu2 %v1018_v20  ;;  %664 = vperm.xlu0 %900, %v1058_v3  }
  0x45   :  { %422 = vperm.xlu2 %889, %v1058_v3  }
  0x4b   :  { %891 = vset.pattern.permute.xlu1 %v1020_v22 }
  0x4c   :  { %466 = vperm.xlu1 %891, %v1058_v3   ;;  %904 = vset.pattern.permute.xlu0 %v1022_v24 }
  0x4d   :  { %892 = vset.pattern.permute.xlu2 %v1021_v23 }
  0x4e   :  { %488 = vperm.xlu2 %892, %v1058_v3  }
  0x54   :  { %893 = vset.pattern.permute.xlu1 %v1023_v25 }
  0x55   :  { %510 = vperm.xlu1 %893, %v1058_v3  }
  0x56   :  { %894 = vset.pattern.permute.xlu2 %v1024_v26 }
  0x57   :  { %532 = vperm.xlu2 %894, %v1058_v3  }
  0x5d   :  { %896 = vset.pattern.permute.xlu1 %v1025_v27  ;;  %v178_v27 = vld [vmem:[#allocation7 + $0x6] ss:$8 sm:$0x7] }
  0x5e   :  { %576 = vperm.xlu1 %896, %v1058_v3   ;;  %v184_v42 = vperm.slane %v178_v27, 0 }
  0x5f   :  { %897 = vset.pattern.permute.xlu2 %v1026_v28 }
  0x60   :  { %598 = vperm.xlu2 %897, %v1058_v3  }
  0x66   :  { %898 = vset.pattern.permute.xlu1 %v1027_v29 }
  0x67   :  { %620 = vperm.xlu1 %898, %v1058_v3  }
  0x68   :  { %899 = vset.pattern.permute.xlu2 %v1028_v30  ;;  %v137_v33 = vpop.permute.xlu2 %136 }
  0x69   :  { %642 = vperm.xlu2 %899, %v1058_v3   ;;  %v147_v25 = vsub.f32 %v137_v33, %v141_v56  ;;  %v148_v26 = vsub.f32 %v137_v33, %v142_v8 }
  0x6b   :  { %v150_v48 = vand.u32 2147483647, %v147_v25 }
  0x6f   :  { %901 = vset.pattern.permute.xlu1 %v1029_v31 }
  0x70   :  { %686 = vperm.xlu1 %901, %v1058_v3  }
  0x71   :  { %902 = vset.pattern.permute.xlu2 %v1030_v32 }
  0x72   :  { %708 = vperm.xlu2 %902, %v1058_v3   ;;  %v1092_v34 = vpop.permute.xlu2 %158 }
  0x73   :  { %v169_v38 = vsub.f32 %v1092_v34, %v163_v10 }
  0x78   :  { %903 = vset.pattern.permute.xlu1 %v1022_v24  ;;  %v146_v24 = vsub.f32 %v137_v33, %v140_v55 }
  0x79   :  { %730 = vperm.xlu1 %903, %v1058_v3  }
  0x7b   :  { %v1094_v54 = vpop.permute.xlu2 %202 }
  0x7f   :  { %v93_v36 = vpop.permute.xlu1 %92 }
  0x80   :  { %v49_v37 = vpop.permute.xlu0 %48  ;;  %v102_v57 = vsub.f32 %v93_v36, %v96_v43  ;;  %v103_v0 = vsub.f32 %v93_v36, %v97_v45  ;;  %v104_v1 = vsub.f32 %v93_v36, %v98_v46  ;;  %v200_v43 = vld [vmem:[#allocation7 + $0x7] ss:$8 sm:$0x7]  ;;  %v185_v45 = vperm.slane %v178_v27, 1 }
  0x81   :  { %v58_v47 = vsub.f32 %v49_v37, %v52_v39  ;;  %v59_v50 = vsub.f32 %v49_v37, %v53_v40  ;;  %v60_v51 = vsub.f32 %v49_v37, %v54_v41  ;;  %v168_v37 = vsub.f32 %v1092_v34, %v162_v9 }
  0x82   :  { %v105_v16 = vand.u32 2147483647, %v102_v57  ;;  %v106_v17 = vand.u32 2147483647, %v103_v0  ;;  %v107_v20 = vand.u32 2147483647, %v104_v1  ;;  %v170_v41 = vsub.f32 %v1092_v34, %v164_v11 }
  0x83   :  { %v61_v2 = vand.u32 2147483647, %v58_v47  ;;  %v62_v4 = vand.u32 2147483647, %v59_v50  ;;  %v63_v5 = vand.u32 2147483647, %v60_v51 }
  0x84   :  { %v1096_v32 = vpop.permute.xlu2 %268  ;;  %v186_v46 = vperm.slane %v178_v27, 2  ;;  %v149_v47 = vand.u32 2147483647, %v146_v24  ;;  %v171_v50 = vand.u32 2147483647, %v168_v37 }
  0x85   :  { %v172_v51 = vand.u32 2147483647, %v169_v38  ;;  %v173_v56 = vand.u32 2147483647, %v170_v41 }
  0x86   :  { %v288_v24 = vld [vmem:[#allocation7 + $0x1b] ss:$8 sm:$0x7]  ;;  %v310_v38 = vld [vmem:[#allocation7 + $0x1c] ss:$8 sm:$0x7] }
  0x87   :  { %v294_v37 = vperm.slane %v288_v24, 0  ;;  %v295_v41 = vperm.slane %v288_v24, 1 }
  0x88   :  { %v115_v61 = vpop.permute.xlu1 %114 }
  0x89   :  { %v71_v62 = vpop.permute.xlu0 %70  ;;  %v124_v12 = vsub.f32 %v115_v61, %v118_v58  ;;  %v125_v18 = vsub.f32 %v115_v61, %v119_v59  ;;  %v126_v19 = vsub.f32 %v115_v61, %v120_v60  ;;  %v208_v58 = vperm.slane %v200_v43, 2  ;;  %v222_v59 = vld [vmem:[#allocation7 + $0x18] ss:$8 sm:$0x7] }
  0x8a   :  { %v80_v3 = vsub.f32 %v71_v62, %v74_v49  ;;  %v81_v6 = vsub.f32 %v71_v62, %v75_v52  ;;  %v82_v7 = vsub.f32 %v71_v62, %v76_v53  ;;  %v151_v49 = vand.u32 2147483647, %v148_v26 }
  0x8b   :  { %v127_v28 = vand.u32 2147483647, %v124_v12  ;;  %v128_v35 = vand.u32 2147483647, %v125_v18  ;;  %v129_v36 = vand.u32 2147483647, %v126_v19 }
  0x8c   :  { %v83_v13 = vand.u32 2147483647, %v80_v3  ;;  %v84_v14 = vand.u32 2147483647, %v81_v6  ;;  %v85_v15 = vand.u32 2147483647, %v82_v7  ;;  %v214_v6 = vsub.f32 %v1094_v54, %v208_v58 }
  0x8d   :  { %v206_v52 = vperm.slane %v200_v43, 0  ;;  %v207_v53 = vperm.slane %v200_v43, 1  ;;  %v228_v1 = vperm.slane %v222_v59, 0  ;;  %v244_v3 = vld [vmem:[#allocation7 + $0x19] ss:$8 sm:$0x7]  ;;  %v1104_v9 = vpop.permute.xlu2 %312 }
  0x8e   :  { %v86_v21 = vadd.f32 %v83_v13, %v61_v2  ;;  %v87_v22 = vadd.f32 %v84_v14, %v62_v4  ;;  %v88_v23 = vadd.f32 %v85_v15, %v63_v5  ;;  %v229_v2 = vperm.slane %v222_v59, 1 }
  0x8f   :  { %v212_v63 = vsub.f32 %v1094_v54, %v206_v52  ;;  %v213_v0 = vsub.f32 %v1094_v54, %v207_v53  ;;  %v230_v7 = vperm.slane %v222_v59, 2  ;;  %v250_v15 = vperm.slane %v244_v3, 0 }
  0x90   :  { %v108_v29 = vadd.f32 %v105_v16, %v86_v21  ;;  %v109_v30 = vadd.f32 %v106_v17, %v87_v22  ;;  %v110_v31 = vadd.f32 %v107_v20, %v88_v23  ;;  %v266_v16 = vld [vmem:[#allocation7 + $0x1a] ss:$8 sm:$0x7]  ;;  %v251_v19 = vperm.slane %v244_v3, 1 }
  0x91   :  { %v181_v39 = vpop.permute.xlu1 %180  ;;  %v215_v17 = vand.u32 2147483647, %v212_v63  ;;  %v216_v18 = vand.u32 2147483647, %v213_v0  ;;  %v252_v20 = vperm.slane %v244_v3, 2  ;;  %v318_v59 = vperm.slane %v310_v38, 2 }
  0x92   :  { %v130_v40 = vadd.f32 %v127_v28, %v108_v29  ;;  %v131_v33 = vadd.f32 %v128_v35, %v109_v30  ;;  %v132_v44 = vadd.f32 %v129_v36, %v110_v31  ;;  %v190_v57 = vsub.f32 %v181_v39, %v184_v42  ;;  %v225_v14 = vpop.permute.xlu0 %224  ;;  %v332_v63 = vld [vmem:[#allocation7 + $0x1d] ss:$8 sm:$0x7] }
  0x93   :  { %v191_v61 = vsub.f32 %v181_v39, %v185_v45  ;;  %v192_v62 = vsub.f32 %v181_v39, %v186_v46  ;;  %v217_v22 = vand.u32 2147483647, %v214_v6  ;;  %v234_v23 = vsub.f32 %v225_v14, %v228_v1 }
  0x94   :  { %v152_v55 = vadd.f32 %v149_v47, %v130_v40  ;;  %v153_v60 = vadd.f32 %v150_v48, %v131_v33  ;;  %v154_v34 = vadd.f32 %v151_v49, %v132_v44  ;;  %v193_v5 = vand.u32 2147483647, %v190_v57 }
  0x95   :  { %v194_v12 = vand.u32 2147483647, %v191_v61  ;;  %v195_v13 = vand.u32 2147483647, %v192_v62  ;;  %v235_v26 = vsub.f32 %v225_v14, %v229_v2  ;;  %v236_v27 = vsub.f32 %v225_v14, %v230_v7 }
  0x96   :  { %v174_v4 = vadd.f32 %v171_v50, %v152_v55  ;;  %v175_v10 = vadd.f32 %v172_v51, %v153_v60  ;;  %v176_v11 = vadd.f32 %v173_v56, %v154_v34  ;;  %v272_v29 = vperm.slane %v266_v16, 0  ;;  %v1108_v51 = vpop.permute.xlu2 %378 }
  0x97   :  { %v273_v30 = vperm.slane %v266_v16, 1  ;;  %v274_v36 = vperm.slane %v266_v16, 2  ;;  %v237_v40 = vand.u32 2147483647, %v234_v23  ;;  %v296_v42 = vperm.slane %v288_v24, 2 }
  0x98   :  { %v196_v21 = vadd.f32 %v193_v5, %v174_v4  ;;  %v197_v54 = vadd.f32 %v194_v12, %v175_v10  ;;  %v198_v25 = vadd.f32 %v195_v13, %v176_v11  ;;  %v238_v44 = vand.u32 2147483647, %v235_v26 }
  0x99   :  { %v239_v45 = vand.u32 2147483647, %v236_v27  ;;  %v278_v48 = vsub.f32 %v1096_v32, %v272_v29  ;;  %v279_v49 = vsub.f32 %v1096_v32, %v273_v30  ;;  %v316_v50 = vperm.slane %v310_v38, 0 }
  0x9a   :  { %v247_v8 = vpop.permute.xlu1 %246  ;;  %v218_v39 = vadd.f32 %v215_v17, %v196_v21  ;;  %v219_v43 = vadd.f32 %v216_v18, %v197_v54  ;;  %v220_v33 = vadd.f32 %v217_v22, %v198_v25  ;;  %v280_v55 = vsub.f32 %v1096_v32, %v274_v36  ;;  %v354_v32 = vld [vmem:[#allocation7 + $0x1e] ss:$8 sm:$0x7]  ;;  %v376_v25 = vld [vmem:[#allocation7 + $0x1f] ss:$8 sm:$0x7] }
  0x9b   :  { %v256_v28 = vsub.f32 %v247_v8, %v250_v15  ;;  %v257_v31 = vsub.f32 %v247_v8, %v251_v19  ;;  %v258_v35 = vsub.f32 %v247_v8, %v252_v20  ;;  %v317_v56 = vperm.slane %v310_v38, 1  ;;  %v335_v16 = vpop.permute.xlu0 %334 }
  0x9c   :  { %v240_v57 = vadd.f32 %v237_v40, %v218_v39  ;;  %v241_v60 = vadd.f32 %v238_v44, %v219_v43  ;;  %v242_v34 = vadd.f32 %v239_v45, %v220_v33  ;;  %v281_v1 = vand.u32 2147483647, %v278_v48  ;;  %v420_v33 = vld [vmem:[#allocation7 + $0x31] ss:$8 sm:$0x7] }
  0x9d   :  { %v259_v47 = vand.u32 2147483647, %v256_v28  ;;  %v260_v52 = vand.u32 2147483647, %v257_v31  ;;  %v261_v53 = vand.u32 2147483647, %v258_v35  ;;  %v322_v3 = vsub.f32 %v1104_v9, %v316_v50 }
  0x9e   :  { %v282_v2 = vand.u32 2147483647, %v279_v49  ;;  %v283_v6 = vand.u32 2147483647, %v280_v55  ;;  %v323_v7 = vsub.f32 %v1104_v9, %v317_v56  ;;  %v324_v10 = vsub.f32 %v1104_v9, %v318_v59 }
  0x9f   :  { %v262_v0 = vadd.f32 %v259_v47, %v240_v57  ;;  %v263_v4 = vadd.f32 %v260_v52, %v241_v60  ;;  %v264_v5 = vadd.f32 %v261_v53, %v242_v34  ;;  %v338_v11 = vperm.slane %v332_v63, 0  ;;  %v398_v9 = vld [vmem:[#allocation7 + $0x30] ss:$8 sm:$0x7]  ;;  %v423_v29 = vpop.permute.xlu2 %422 }
  0xa0   :  { %v339_v14 = vperm.slane %v332_v63, 1  ;;  %v340_v15 = vperm.slane %v332_v63, 2  ;;  %v325_v18 = vand.u32 2147483647, %v322_v3  ;;  %v360_v19 = vperm.slane %v354_v32, 0 }
  0xa1   :  { %v284_v17 = vadd.f32 %v281_v1, %v262_v0  ;;  %v361_v20 = vperm.slane %v354_v32, 1  ;;  %v285_v22 = vadd.f32 %v282_v2, %v263_v4  ;;  %v286_v23 = vadd.f32 %v283_v6, %v264_v5  ;;  %v442_v57 = vld [vmem:[#allocation7 + $0x32] ss:$8 sm:$0x7] }
  0xa2   :  { %v326_v24 = vand.u32 2147483647, %v323_v7  ;;  %v362_v54 = vperm.slane %v354_v32, 2  ;;  %v327_v27 = vand.u32 2147483647, %v324_v10  ;;  %v344_v28 = vsub.f32 %v335_v16, %v338_v11 }
  0xa3   :  { %v291_v46 = vpop.permute.xlu1 %290  ;;  %v345_v35 = vsub.f32 %v335_v16, %v339_v14  ;;  %v346_v36 = vsub.f32 %v335_v16, %v340_v15  ;;  %v382_v38 = vperm.slane %v376_v25, 0  ;;  %v383_v39 = vperm.slane %v376_v25, 1  ;;  %v464_v15 = vld [vmem:[#allocation7 + $0x33] ss:$8 sm:$0x7] }
  0xa4   :  { %v300_v58 = vsub.f32 %v291_v46, %v294_v37  ;;  %v301_v61 = vsub.f32 %v291_v46, %v295_v41  ;;  %v302_v62 = vsub.f32 %v291_v46, %v296_v42  ;;  %v384_v42 = vperm.slane %v376_v25, 2 }
  0xa5   :  { %v404_v43 = vperm.slane %v398_v9, 0  ;;  %v347_v45 = vand.u32 2147483647, %v344_v28  ;;  %v405_v46 = vperm.slane %v398_v9, 1  ;;  %v406_v47 = vperm.slane %v398_v9, 2 }
  0xa6   :  { %v303_v8 = vand.u32 2147483647, %v300_v58  ;;  %v304_v12 = vand.u32 2147483647, %v301_v61  ;;  %v305_v13 = vand.u32 2147483647, %v302_v62  ;;  %v388_v55 = vsub.f32 %v1108_v51, %v382_v38 }
  0xa7   :  { %v348_v50 = vand.u32 2147483647, %v345_v35  ;;  %v349_v52 = vand.u32 2147483647, %v346_v36  ;;  %v389_v56 = vsub.f32 %v1108_v51, %v383_v39  ;;  %v390_v60 = vsub.f32 %v1108_v51, %v384_v42  ;;  %v445_v51 = vpop.permute.xlu0 %444 }
  0xa8   :  { %v306_v26 = vadd.f32 %v303_v8, %v284_v17  ;;  %v307_v30 = vadd.f32 %v304_v12, %v285_v22  ;;  %v308_v31 = vadd.f32 %v305_v13, %v286_v23  ;;  %v426_v61 = vperm.slane %v420_v33, 0  ;;  %v489_v10 = vpop.permute.xlu2 %488 }
  0xa9   :  { %v427_v0 = vperm.slane %v420_v33, 1  ;;  %v428_v1 = vperm.slane %v420_v33, 2  ;;  %v391_v7 = vand.u32 2147483647, %v388_v55  ;;  %v392_v32 = vand.u32 2147483647, %v389_v56 }
  0xaa   :  { %v328_v44 = vadd.f32 %v325_v18, %v306_v26  ;;  %v329_v48 = vadd.f32 %v326_v24, %v307_v30  ;;  %v330_v49 = vadd.f32 %v327_v27, %v308_v31  ;;  %v448_v8 = vperm.slane %v442_v57, 0 }
  0xab   :  { %v393_v13 = vand.u32 2147483647, %v390_v60  ;;  %v449_v14 = vperm.slane %v442_v57, 1  ;;  %v432_v17 = vsub.f32 %v423_v29, %v426_v61  ;;  %v450_v18 = vperm.slane %v442_v57, 2 }
  0xac   :  { %v357_v21 = vpop.permute.xlu1 %356  ;;  %v350_v62 = vadd.f32 %v347_v45, %v328_v44  ;;  %v351_v2 = vadd.f32 %v348_v50, %v329_v48  ;;  %v352_v3 = vadd.f32 %v349_v52, %v330_v49  ;;  %v433_v22 = vsub.f32 %v423_v29, %v427_v0  ;;  %v508_v44 = vld [vmem:[#allocation7 + $0x35] ss:$8 sm:$0x7] }
  0xad   :  { %v366_v37 = vsub.f32 %v357_v21, %v360_v19  ;;  %v367_v40 = vsub.f32 %v357_v21, %v361_v20  ;;  %v368_v41 = vsub.f32 %v357_v21, %v362_v54  ;;  %v486_v19 = vld [vmem:[#allocation7 + $0x34] ss:$8 sm:$0x7]  ;;  %v434_v23 = vsub.f32 %v423_v29, %v428_v1 }
  0xae   :  { %v454_v54 = vsub.f32 %v445_v51, %v448_v8  ;;  %v470_v25 = vperm.slane %v464_v15, 0  ;;  %v471_v26 = vperm.slane %v464_v15, 1  ;;  %v455_v9 = vsub.f32 %v445_v51, %v449_v14 }
  0xaf   :  { %v369_v53 = vand.u32 2147483647, %v366_v37  ;;  %v370_v58 = vand.u32 2147483647, %v367_v40  ;;  %v371_v59 = vand.u32 2147483647, %v368_v41  ;;  %v456_v36 = vsub.f32 %v445_v51, %v450_v18 }
  0xb0   :  { %v492_v30 = vperm.slane %v486_v19, 0  ;;  %v435_v35 = vand.u32 2147483647, %v432_v17  ;;  %v472_v37 = vperm.slane %v464_v15, 2  ;;  %v436_v41 = vand.u32 2147483647, %v433_v22 }
  0xb1   :  { %v372_v6 = vadd.f32 %v369_v53, %v350_v62  ;;  %v373_v11 = vadd.f32 %v370_v58, %v351_v2  ;;  %v374_v12 = vadd.f32 %v371_v59, %v352_v3  ;;  %v437_v42 = vand.u32 2147483647, %v434_v23  ;;  %v530_v53 = vld [vmem:[#allocation7 + $0x36] ss:$8 sm:$0x7]  ;;  %v533_v55 = vpop.permute.xlu2 %532 }
  0xb2   :  { %v493_v29 = vperm.slane %v486_v19, 1  ;;  %v458_v45 = vand.u32 2147483647, %v455_v9  ;;  %v498_v48 = vsub.f32 %v489_v10, %v492_v30  ;;  %v459_v50 = vand.u32 2147483647, %v456_v36 }
  0xb3   :  { %v394_v24 = vadd.f32 %v391_v7, %v372_v6  ;;  %v395_v27 = vadd.f32 %v392_v32, %v373_v11  ;;  %v396_v28 = vadd.f32 %v393_v13, %v374_v12  ;;  %v514_v58 = vperm.slane %v508_v44, 0  ;;  %v552_v62 = vld [vmem:[#allocation7 + $0x37] ss:$8 sm:$0x7] }
  0xb4   :  { %v515_v59 = vperm.slane %v508_v44, 1  ;;  %v516_v61 = vperm.slane %v508_v44, 2  ;;  %v501_v1 = vand.u32 2147483647, %v498_v48  ;;  %v536_v2 = vperm.slane %v530_v53, 0 }
  0xb5   :  { %v401_v34 = vpop.permute.xlu1 %400  ;;  %v538_v6 = vperm.slane %v530_v53, 2  ;;  %v558_v11 = vperm.slane %v552_v62, 0  ;;  %v559_v12 = vperm.slane %v552_v62, 1  ;;  %v574_v23 = vld [vmem:[#allocation7 + $0x48] ss:$8 sm:$0x7] }
  0xb6   :  { %v410_v63 = vsub.f32 %v401_v34, %v404_v43  ;;  %v411_v4 = vsub.f32 %v401_v34, %v405_v46  ;;  %v412_v5 = vsub.f32 %v401_v34, %v406_v47  ;;  %v457_v43 = vand.u32 2147483647, %v454_v54  ;;  %v596_v30 = vld [vmem:[#allocation7 + $0x49] ss:$8 sm:$0x7] }
  0xb7   :  { %v494_v47 = vperm.slane %v486_v19, 2  ;;  %v499_v34 = vsub.f32 %v489_v10, %v493_v29  ;;  %v542_v22 = vsub.f32 %v533_v55, %v536_v2  ;;  %v602_v29 = vperm.slane %v596_v30, 0 }
  0xb8   :  { %v413_v16 = vand.u32 2147483647, %v410_v63  ;;  %v414_v20 = vand.u32 2147483647, %v411_v4  ;;  %v415_v21 = vand.u32 2147483647, %v412_v5 }
  0xb9   :  { %v500_v0 = vsub.f32 %v489_v10, %v494_v47  ;;  %v537_v5 = vperm.slane %v530_v53, 1  ;;  %v502_v18 = vand.u32 2147483647, %v499_v34  ;;  %v560_v10 = vperm.slane %v552_v62, 2 }
  0xba   :  { %v416_v31 = vadd.f32 %v413_v16, %v394_v24  ;;  %v417_v39 = vadd.f32 %v414_v20, %v395_v27  ;;  %v418_v40 = vadd.f32 %v415_v21, %v396_v28  ;;  %v555_v16 = vpop.permute.xlu0 %554  ;;  %v544_v28 = vsub.f32 %v533_v55, %v538_v6 }
  0xbb   :  { %v503_v19 = vand.u32 2147483647, %v500_v0  ;;  %v543_v54 = vsub.f32 %v533_v55, %v537_v5  ;;  %v565_v9 = vsub.f32 %v555_v16, %v559_v12  ;;  %v566_v36 = vsub.f32 %v555_v16, %v560_v10  ;;  %v640_v55 = vld [vmem:[#allocation7 + $0x4b] ss:$8 sm:$0x7] }
  0xbc   :  { %v438_v49 = vadd.f32 %v435_v35, %v416_v31  ;;  %v439_v56 = vadd.f32 %v436_v41, %v417_v39  ;;  %v440_v57 = vadd.f32 %v437_v42, %v418_v40  ;;  %v599_v31 = vpop.permute.xlu2 %598  ;;  %v545_v41 = vand.u32 2147483647, %v542_v22  ;;  %v662_v5 = vld [vmem:[#allocation7 + $0x4c] ss:$8 sm:$0x7] }
  0xbd   :  { %v582_v42 = vperm.slane %v574_v23, 2  ;;  %v603_v44 = vperm.slane %v596_v30, 1  ;;  %v604_v48 = vperm.slane %v596_v30, 2  ;;  %v608_v34 = vsub.f32 %v599_v31, %v602_v29 }
  0xbe   :  { %v467_v38 = vpop.permute.xlu1 %466  ;;  %v460_v3 = vadd.f32 %v457_v43, %v438_v49  ;;  %v461_v7 = vadd.f32 %v458_v45, %v439_v56  ;;  %v462_v32 = vadd.f32 %v459_v50, %v440_v57  ;;  %v618_v49 = vld [vmem:[#allocation7 + $0x4a] ss:$8 sm:$0x7]  ;;  %v568_v57 = vand.u32 2147483647, %v565_v9 }
  0xbf   :  { %v476_v33 = vsub.f32 %v467_v38, %v470_v25  ;;  %v477_v46 = vsub.f32 %v467_v38, %v471_v26  ;;  %v478_v52 = vsub.f32 %v467_v38, %v472_v37  ;;  %v564_v25 = vsub.f32 %v555_v16, %v558_v11  ;;  %v684_v9 = vld [vmem:[#allocation7 + $0x4d] ss:$8 sm:$0x7] }
  0xc0   :  { %v580_v37 = vperm.slane %v574_v23, 0  ;;  %v581_v38 = vperm.slane %v574_v23, 1  ;;  %v624_v62 = vperm.slane %v618_v49, 0  ;;  %v646_v2 = vperm.slane %v640_v55, 0 }
  0xc1   :  { %v479_v60 = vand.u32 2147483647, %v476_v33  ;;  %v480_v63 = vand.u32 2147483647, %v477_v46  ;;  %v481_v4 = vand.u32 2147483647, %v478_v52 }
  0xc2   :  { %v546_v33 = vand.u32 2147483647, %v543_v54  ;;  %v547_v46 = vand.u32 2147483647, %v544_v28  ;;  %v567_v50 = vand.u32 2147483647, %v564_v25 }
  0xc3   :  { %v482_v13 = vadd.f32 %v479_v60, %v460_v3  ;;  %v483_v17 = vadd.f32 %v480_v63, %v461_v7  ;;  %v484_v20 = vadd.f32 %v481_v4, %v462_v32  ;;  %v647_v4 = vperm.slane %v640_v55, 1 }
  0xc4   :  { %v625_v32 = vperm.slane %v618_v49, 1  ;;  %v643_v11 = vpop.permute.xlu2 %642  ;;  %v669_v22 = vperm.slane %v662_v5, 1  ;;  %v670_v28 = vperm.slane %v662_v5, 2 }
  0xc5   :  { %v504_v26 = vadd.f32 %v501_v1, %v482_v13  ;;  %v505_v35 = vadd.f32 %v502_v18, %v483_v17  ;;  %v506_v39 = vadd.f32 %v503_v19, %v484_v20  ;;  %v610_v1 = vsub.f32 %v599_v31, %v604_v48 }
  0xc6   :  { %v611_v13 = vand.u32 2147483647, %v608_v34  ;;  %v668_v18 = vperm.slane %v662_v5, 0  ;;  %v652_v20 = vsub.f32 %v643_v11, %v646_v2 }
  0xc7   :  { %v511_v8 = vpop.permute.xlu1 %510  ;;  %v613_v17 = vand.u32 2147483647, %v610_v1  ;;  %v728_v1 = vld [vmem:[#allocation7 + $0x4f] ss:$8 sm:$0x7] }
  0xc8   :  { %v520_v14 = vsub.f32 %v511_v8, %v514_v58  ;;  %v521_v51 = vsub.f32 %v511_v8, %v515_v59  ;;  %v522_v15 = vsub.f32 %v511_v8, %v516_v61  ;;  %v569_v58 = vand.u32 2147483647, %v566_v36 }
  0xc9   :  { %v609_v61 = vsub.f32 %v599_v31, %v603_v44  ;;  %v626_v8 = vperm.slane %v618_v49, 2  ;;  %v690_v44 = vperm.slane %v684_v9, 0 }
  0xca   :  { %v523_v21 = vand.u32 2147483647, %v520_v14  ;;  %v524_v24 = vand.u32 2147483647, %v521_v51  ;;  %v525_v27 = vand.u32 2147483647, %v522_v15 }
  0xcb   :  { %v612_v14 = vand.u32 2147483647, %v609_v61  ;;  %v648_v51 = vperm.slane %v640_v55, 2 }
  0xcc   :  { %v526_v40 = vadd.f32 %v523_v21, %v504_v26  ;;  %v527_v43 = vadd.f32 %v524_v24, %v505_v35  ;;  %v528_v45 = vadd.f32 %v525_v27, %v506_v39  ;;  %v653_v21 = vsub.f32 %v643_v11, %v647_v4  ;;  %v665_v26 = vpop.permute.xlu0 %664 }
  0xcd   :  { %v654_v27 = vsub.f32 %v643_v11, %v648_v51  ;;  %v675_v39 = vsub.f32 %v665_v26, %v669_v22  ;;  %v676_v49 = vsub.f32 %v665_v26, %v670_v28  ;;  %v750_v28 = vstv %s1126_s0  ;;  %s1031_s0 = smov [#allocation9]  }
  0xce   :  { %v548_v56 = vadd.f32 %v545_v41, %v526_v40  ;;  %v549_v60 = vadd.f32 %v546_v33, %v527_v43  ;;  %v550_v63 = vadd.f32 %v547_v46, %v528_v45  ;;  %v706_v40 = vld [vmem:[#allocation7 + $0x4e] ss:$8 sm:$0x7]  ;;  %v655_v43 = vand.u32 2147483647, %v652_v20  ;;  %s819_s24 = sshll.u32 %s1031_s0, 4  ;;  %s820_s24 = int_to_ptr.vmem [resolvable:$true] %s819_s24 }
  0xcf   :  { %v656_v33 = vand.u32 2147483647, %v653_v21  ;;  %v691_v45 = vperm.slane %v684_v9, 1  ;;  %v692_v46 = vperm.slane %v684_v9, 2  ;;  %v657_v48 = vand.u32 2147483647, %v654_v27 }
  0xd0   :  { %v577_v47 = vpop.permute.xlu1 %576  ;;  %v570_v6 = vadd.f32 %v567_v50, %v548_v56  ;;  %v571_v12 = vadd.f32 %v568_v57, %v549_v60  ;;  %v572_v15 = vadd.f32 %v569_v58, %v550_v63  ;;  %v712_v50 = vperm.slane %v706_v40, 0 }
  0xd1   :  { %v586_v52 = vsub.f32 %v577_v47, %v580_v37  ;;  %v587_v53 = vsub.f32 %v577_v47, %v581_v38  ;;  %v588_v59 = vsub.f32 %v577_v47, %v582_v42  ;;  %v674_v38 = vsub.f32 %v665_v26, %v668_v18 }
  0xd2   :  { %v678_v56 = vand.u32 2147483647, %v675_v39  ;;  %v714_v58 = vperm.slane %v706_v40, 2 }
  0xd3   :  { %v589_v0 = vand.u32 2147483647, %v586_v52  ;;  %v590_v3 = vand.u32 2147483647, %v587_v53  ;;  %v591_v7 = vand.u32 2147483647, %v588_v59  ;;  %v709_v59 = vpop.permute.xlu2 %708 }
  0xd4   :  { %v713_v52 = vperm.slane %v706_v40, 1  ;;  %v677_v55 = vand.u32 2147483647, %v674_v38  ;;  %v718_v4 = vsub.f32 %v709_v59, %v712_v50 }
  0xd5   :  { %v592_v16 = vadd.f32 %v589_v0, %v570_v6  ;;  %v593_v19 = vadd.f32 %v590_v3, %v571_v12  ;;  %v594_v23 = vadd.f32 %v591_v7, %v572_v15  ;;  %v679_v0 = vand.u32 2147483647, %v676_v49 }
  0xd6   :  { %v719_v5 = vsub.f32 %v709_v59, %v713_v52  ;;  %v720_v7 = vsub.f32 %v709_v59, %v714_v58  ;;  %v734_v12 = vperm.slane %v728_v1, 0 }
  0xd7   :  { %v614_v30 = vadd.f32 %v611_v13, %v592_v16  ;;  %v615_v37 = vadd.f32 %v612_v14, %v593_v19  ;;  %v616_v41 = vadd.f32 %v613_v17, %v594_v23  ;;  %v735_v13 = vperm.slane %v728_v1, 1 }
  0xd8   :  { %v736_v14 = vperm.slane %v728_v1, 2  ;;  %v721_v16 = vand.u32 2147483647, %v718_v4  ;;  %v722_v17 = vand.u32 2147483647, %v719_v5 }
  0xd9   :  { %v621_v10 = vpop.permute.xlu1 %620  ;;  %v723_v19 = vand.u32 2147483647, %v720_v7 }
  0xda   :  { %v630_v24 = vsub.f32 %v621_v10, %v624_v62  ;;  %v631_v54 = vsub.f32 %v621_v10, %v625_v32  ;;  %v632_v25 = vsub.f32 %v621_v10, %v626_v8 }
  0xdc   :  { %v633_v31 = vand.u32 2147483647, %v630_v24  ;;  %v634_v35 = vand.u32 2147483647, %v631_v54  ;;  %v635_v36 = vand.u32 2147483647, %v632_v25 }
  0xde   :  { %v636_v42 = vadd.f32 %v633_v31, %v614_v30  ;;  %v637_v29 = vadd.f32 %v634_v35, %v615_v37  ;;  %v638_v47 = vadd.f32 %v635_v36, %v616_v41 }
  0xe0   :  { %v658_v53 = vadd.f32 %v655_v43, %v636_v42  ;;  %v659_v60 = vadd.f32 %v656_v33, %v637_v29  ;;  %v660_v63 = vadd.f32 %v657_v48, %v638_v47 }
  0xe2   :  { %v687_v57 = vpop.permute.xlu1 %686  ;;  %v680_v32 = vadd.f32 %v677_v55, %v658_v53  ;;  %v681_v8 = vadd.f32 %v678_v56, %v659_v60  ;;  %v682_v11 = vadd.f32 %v679_v0, %v660_v63 }
  0xe3   :  { %v696_v34 = vsub.f32 %v687_v57, %v690_v44  ;;  %v697_v61 = vsub.f32 %v687_v57, %v691_v45  ;;  %v698_v62 = vsub.f32 %v687_v57, %v692_v46 }
  0xe5   :  { %v699_v2 = vand.u32 2147483647, %v696_v34  ;;  %v700_v3 = vand.u32 2147483647, %v697_v61  ;;  %v701_v6 = vand.u32 2147483647, %v698_v62 }
  0xe7   :  { %v702_v51 = vadd.f32 %v699_v2, %v680_v32  ;;  %v703_v15 = vadd.f32 %v700_v3, %v681_v8  ;;  %v704_v18 = vadd.f32 %v701_v6, %v682_v11 }
  0xe9   :  { %v724_v23 = vadd.f32 %v721_v16, %v702_v51  ;;  %v725_v24 = vadd.f32 %v722_v17, %v703_v15  ;;  %v726_v54 = vadd.f32 %v723_v19, %v704_v18 }
  0xeb   :  { %v731_v10 = vpop.permute.xlu1 %730 }
  0xec   :  { %v740_v20 = vsub.f32 %v731_v10, %v734_v12  ;;  %v741_v21 = vsub.f32 %v731_v10, %v735_v13  ;;  %v742_v22 = vsub.f32 %v731_v10, %v736_v14 }
  0xee   :  { %v743_v25 = vand.u32 2147483647, %v740_v20  ;;  %v744_v26 = vand.u32 2147483647, %v741_v21  ;;  %v745_v27 = vand.u32 2147483647, %v742_v22 }
  0xf0   :  { %v746_v9 = vadd.f32 %v743_v25, %v724_v23  ;;  %v747_v30 = vadd.f32 %v744_v26, %v725_v24  ;;  %v748_v31 = vadd.f32 %v745_v27, %v726_v54 }
  0xf2   :  { %v751_v35 = vsub.f32 %v750_v28, %v746_v9  ;;  %v752_v36 = vsub.f32 %v750_v28, %v747_v30  ;;  %v753_v37 = vsub.f32 %v750_v28, %v748_v31 }
  0xf4   :  { %v832_v38 = vmul.f32 -1.442695, %v751_v35  ;;  %v833_v39 = vmul.f32 -1.442695, %v752_v36  ;;  %v834_v40 = vmul.f32 -1.442695, %v753_v37 }
  0xf6   :  { %905 = vpow2.f32 %v832_v38 }
  0xf7   :  { %907 = vpow2.f32 %v833_v39 }
  0xf8   :  { %909 = vpow2.f32 %v834_v40 }
  0xfc   :  { %v906_v41 = vpop.eup %905 }
  0xfd   :  { %v908_v42 = vpop.eup %907  ;;  %v763_v43 = vadd.f32 1.0, %v906_v41 }
  0xfe   :  { %v910_v33 = vpop.eup %909  ;;  %v764_v29 = vadd.f32 1.0, %v908_v42 }
  0xff   :  { %v765_v44 = vadd.f32 1.0, %v910_v33  ;;  %911 = vrcp.f32 %v763_v43  ;;  %vm771_vm0 = vweird.f32 %v763_v43  ;;  %v775_v53 = vand.u32 2147483647, %v763_v43 }
 0x100   :  { %913 = vrcp.f32 %v764_v29  ;;  %v777_v55 = vand.u32 2147483648, %v763_v43  ;;  %v792_v58 = vand.u32 2147483648, %v764_v29  ;;  %v790_v34 = vand.u32 2147483647, %v764_v29 }
 0x101   :  { %915 = vrcp.f32 %v765_v44  ;;  %v807_v61 = vand.u32 2147483648, %v765_v44  ;;  %v805_v0 = vand.u32 2147483647, %v765_v44  ;;  %vm776_vm5 = vcmp.eq.f32.partialorder %v775_v53, 8.507059e+37 }
 0x102   :  { %v778_v1 = vor.u32 1.1754944e-38, %v777_v55  ;;  %vm786_vm6 = vweird.f32 %v764_v29  ;;  %v793_v4 = vor.u32 1.1754944e-38, %v792_v58  ;;  %vm801_vm8 = vweird.f32 %v765_v44 }
 0x103   :  { %vm791_vm9 = vcmp.eq.f32.partialorder %v790_v34, 8.507059e+37  ;;  %v808_v32 = vor.u32 1.1754944e-38, %v807_v61  ;;  %vm806_vm11 = vcmp.eq.f32.partialorder %v805_v0, 8.507059e+37 }
 0x105   :  { %v912_v45 = vpop.eup %911 }
 0x106   :  { %v914_v46 = vpop.eup %913  ;;  %v767_v47 = vmul.f32 %v912_v45, %v763_v43  ;;  %vm772_vm1 = vweird.f32 %v912_v45 }
 0x107   :  { %v916_v48 = vpop.eup %915  ;;  %v782_v49 = vmul.f32 %v914_v46, %v764_v29  ;;  %vm787_vm2 = vweird.f32 %v914_v46  ;;  %vm773_vm4 = vmor %vm771_vm0, %vm772_vm1 }
 0x108   :  { %v768_v50 = vsub.f32 1.0, %v767_v47  ;;  %v797_v52 = vmul.f32 %v916_v48, %v765_v44  ;;  %vm802_vm3 = vweird.f32 %v916_v48  ;;  %vm788_vm7 = vmor %vm786_vm6, %vm787_vm2 }
 0x109   :  { %v783_v56 = vsub.f32 1.0, %v782_v49  ;;  %vm803_vm10 = vmor %vm801_vm8, %vm802_vm3 }
 0x10a   :  { %v769_v57 = vmul.f32 %v912_v45, %v768_v50  ;;  %v798_v59 = vsub.f32 1.0, %v797_v52 }
 0x10b   :  { %v784_v60 = vmul.f32 %v914_v46, %v783_v56 }
 0x10c   :  { %v770_v62 = vadd.f32 %v912_v45, %v769_v57  ;;  %v799_v63 = vmul.f32 %v916_v48, %v798_v59 }
 0x10d   :  { %v785_v2 = vadd.f32 %v914_v46, %v784_v60 }
 0x10e   :  { %v774_v3 = vsel %vm773_vm4, %v912_v45, %v770_v62  ;;  %v800_v5 = vadd.f32 %v916_v48, %v799_v63 }
 0x10f   :  { %v779_v6 = vsel %vm776_vm5, %v778_v1, %v774_v3  ;;  %v789_v7 = vsel %vm788_vm7, %v914_v46, %v785_v2 }
 0x110   :  { %v794_v8 = vsel %vm791_vm9, %v793_v4, %v789_v7  ;;  %v804_v11 = vsel %vm803_vm10, %v916_v48, %v800_v5  ;;  %811 = vst [vmem:[#allocation9] sm:$0xff] %v779_v6 }
 0x111   :  { %v809_v12 = vsel %vm806_vm11, %v808_v32, %v804_v11  ;;  %812 = vst [vmem:[#allocation9 + $0x8] sm:$0xff] %v794_v8 }
 0x112   :  { %813 = vst [vmem:[#allocation9 + $0x10] sm:$0xff] %v809_v12 }
 0x113   :  { %824 = dma.vmem_to_hbm [thread:$0]  %s820_s24, 384, %s822_s27, [#allocation6]  }
 0x114   :  { %993 = dma.done.wait [#allocation6], 384  }
 0x115   :  { %994 = vsyncadd [#allocation6], 4294966912 }
 0x116   :  { %829 = vsyncpa [#allocation5], 1 }
 0x117   :  { %830 = vsyncpa [#allocation8], 1 }
 0x118   :  { %831 = vsyncpa [#allocation6], 1 }

</bundles_post_ra>
